<compile_context>
chip_gen: v5e
topology: v5e:2x2
jax: 0.10.0
libtpu: 0.0.40
codegen_flags: <defaults>
</compile_context>

<pallas_src>
import jax
import jax.numpy as jnp
from jax import lax
from jax.experimental import pallas as pl
from jax.experimental.pallas import tpu as pltpu

IGNORE = 255
_MAX_TP = 16384                  # lane-tile cap: fits v5e/v6e/v7x VMEM at C=20
_VMEM_LIMIT = 32 * 1024 * 1024   # explicit scoped-VMEM limit (raises v5e's 16 MiB default)


def _round_up(x, m):
    return ((x + m - 1) // m) * m


def _choose_tiling(P, N):
    """Pick a lane tile TP (multiple of 128) and the padded pixel count.

    Large tiles amortize the ~0.35us/step pipeline overhead; when N == 1 the
    pixel axis is split into >= 2 tiles so both v7x TensorCores get work.
    """
    p128 = _round_up(P, 128)
    if p128 <= _MAX_TP:
        if N >= 2 or p128 <= 128:
            return p128, p128
        tp = _round_up((p128 + 1) // 2, 128)
        return tp, _round_up(p128, tp)
    return _MAX_TP, _round_up(p128, _MAX_TP)


# ----------------------------------------------------------------------------
# Pallas kernels
# ----------------------------------------------------------------------------
def _parsing_fused_kernel(logits_ref, labels_ref, key_ref, amax_ref, part_ref):
    """Fused softmax + packed Lovasz sort-key + CE/valid partial sums + argmax.

    logits_ref : (C, TP)  any float dtype (bf16 OK; upcast after load)
    labels_ref : (1, TP) int32
    key_ref    : (C, TP) int32  bits[31:1]=f32 bits of |fg-softmax|, bit[0]=fg
    amax_ref   : (1, TP) int32  per-pixel argmax over classes
    part_ref   : (1, 128) f32   lane0 = sum(CE terms), lane1 = valid pixel count
    """
    logits = logits_ref[...].astype(jnp.float32)
    labels = labels_ref[...]
    C = logits.shape[0]

    m = jnp.max(logits, axis=0, keepdims=True)             # (1, TP)
    e = jnp.exp(logits - m)                                 # (C, TP)
    s = jnp.sum(e, axis=0, keepdims=True)                   # (1, TP)
    inv_s = pl.reciprocal(s, approx=False)                  # 1 recip vs C divides
    lse = jnp.log(s) + m                                    # (1, TP)

    valid = labels != IGNORE                                # (1, TP)
    vf = valid.astype(jnp.float32)
    safe = jnp.where(valid, labels, 0)
    cls = lax.broadcasted_iota(jnp.int32, logits.shape, 0)
    hit = (cls == safe) & valid                             # valid-masked one-hot

    # hoisted broadcasts (JAX does not CSE broadcast_in_dim)
    vf_b = jnp.broadcast_to(vf, logits.shape)
    inv_b = jnp.broadcast_to(inv_s, logits.shape)
    probs = e * inv_b

    # cross-entropy: per-tile partial sums only (no per-pixel HBM writeback)
    logit_y = jnp.sum(jnp.where(hit, logits, 0.0), axis=0, keepdims=True)
    ce_sum = jnp.sum((lse - logit_y) * vf, keepdims=True)   # (1, 1)
    vcnt = jnp.sum(vf, keepdims=True)                       # (1, 1)

    # Lovasz inputs packed into ONE int32 key.  Ignored/padded pixels pack to 0
    # and therefore sort to the tail and contribute exactly nothing downstream.
    fg = hit.astype(jnp.float32)
    err = jnp.abs(fg - probs) * vf_b                        # in [0, 1]
    err_bits = pltpu.bitcast(err, jnp.int32)
    key_ref[...] = (err_bits & jnp.int32(-2)) | hit.astype(jnp.int32)

    # argmax over classes (first-max tie-break, same as torch/jnp argmax)
    amax_ref[...] = jnp.min(jnp.where(logits == m, cls, C), axis=0, keepdims=True)

    lane = lax.broadcasted_iota(jnp.int32, part_ref.shape, 1)
    part_ref[...] = jnp.where(lane == 0, ce_sum,
                              jnp.where(lane == 1, vcnt, 0.0))


def _edge_fused_kernel(logits_ref, labels_ref, amax_ref, part_ref):
    """2-class CE partial sums (class weights applied on host) + edge argmax.

    logits_ref : (2, TP)   labels_ref : (1, TP) int32
    amax_ref   : (1, TP) int32
    part_ref   : (1, 128) f32  lanes 0..3 = [neg_cnt, pos_cnt, neg_ce, pos_ce]
    """
    logits = logits_ref[...].astype(jnp.float32)
    labels = labels_ref[...]

    l0 = logits[0:1, :]
    l1 = logits[1:2, :]
    m = jnp.maximum(l0, l1)
    lse = jnp.log(jnp.exp(l0 - m) + jnp.exp(l1 - m)) + m

    # labels assumed in {0, 1, 255}; 255 (and padding) contributes nothing
    pos = (labels == 1).astype(jnp.float32)
    neg = (labels == 0).astype(jnp.float32)
    neg_cnt = jnp.sum(neg, keepdims=True)
    pos_cnt = jnp.sum(pos, keepdims=True)
    neg_ce = jnp.sum((lse - l0) * neg, keepdims=True)
    pos_ce = jnp.sum((lse - l1) * pos, keepdims=True)

    amax_ref[...] = (l1 > l0).astype(jnp.int32)

    lane = lax.broadcasted_iota(jnp.int32, part_ref.shape, 1)
    part_ref[...] = jnp.where(lane == 0, neg_cnt,
                    jnp.where(lane == 1, pos_cnt,
                    jnp.where(lane == 2, neg_ce,
                    jnp.where(lane == 3, pos_ce, 0.0))))


# ----------------------------------------------------------------------------
# Host-side wrappers
# ----------------------------------------------------------------------------
def _prep(logits_nchw, labels_nhw):
    """Free NCHW -> (N,C,P) reshape; pad pixel axis with zeros / IGNORE labels.

    Logits keep their native dtype (bf16 accepted -> halves input DMA on
    v6e/v7x; the kernels upcast after load).
    """
    N, C, H, W = logits_nchw.shape
    P = H * W
    TP, P_pad = _choose_tiling(P, N)
    logits = logits_nchw.reshape(N, C, P)
    labels = labels_nhw.reshape(N, 1, P).astype(jnp.int32)
    if P_pad != P:
        logits = jnp.pad(logits, ((0, 0), (0, 0), (0, P_pad - P)))
        labels = jnp.pad(labels, ((0, 0), (0, 0), (0, P_pad - P)),
                         constant_values=IGNORE)
    return logits, labels, TP, P_pad


def parsing_head_losses(logits_nchw, labels_nhw):
    """One pass over the logits -> (LovaszSoftmax, CE mean, per-pixel argmax)."""
    N, C, H, W = logits_nchw.shape
    logits, labels, TP, P_pad = _prep(logits_nchw, labels_nhw)
    npt = P_pad // TP
    G = N * npt
    Q = N * P_pad

    key, amax, parts = pl.pallas_call(
        _parsing_fused_kernel,
        out_shape=(jax.ShapeDtypeStruct((C, Q), jnp.int32),
                   jax.ShapeDtypeStruct((1, Q), jnp.int32),
                   jax.ShapeDtypeStruct((1, G * 128), jnp.float32)),
        grid=(N, npt),
        in_specs=[pl.BlockSpec((None, C, TP), lambda n, p: (n, 0, p)),
                  pl.BlockSpec((None, 1, TP), lambda n, p: (n, 0, p))],
        out_specs=(pl.BlockSpec((C, TP), lambda n, p: (0, n * npt + p)),
                   pl.BlockSpec((1, TP), lambda n, p: (0, n * npt + p)),
                   pl.BlockSpec((1, 128), lambda n, p: (0, n * npt + p))),
        compiler_params=pltpu.CompilerParams(
            dimension_semantics=("parallel", "parallel"),
            vmem_limit_bytes=_VMEM_LIMIT),
    )(logits, labels)

    # ---- cross-entropy (weight=None, ignore_index=255, mean over valid) ----
    # NOTE: if every pixel is ignored PyTorch yields NaN; we return ~0 instead.
    parts = parts.reshape(G, 128)
    ce_loss = jnp.sum(parts[:, 0]) / jnp.maximum(jnp.sum(parts[:, 1]), 1.0)

    # ---- LovaszSoftmax (classes='present', per_image=False, ignore=255) ----
    # Single int32 descending sort (negate -> ascending lax.sort -> negate);
    # err and fg are unpacked from the sorted keys.  Ignored/padded pixels
    # have key 0, sit in the tail, and contribute exactly 0.
    # TODO(synk): no Pallas TPU sort primitive; the sort stays in XLA.
    key_sorted = -lax.sort(-key, dimension=1)
    fg_sorted = (key_sorted & 1).astype(jnp.float32)
    err_sorted = lax.bitcast_convert_type(key_sorted & jnp.int32(-2), jnp.float32)
    cum_fg = jnp.cumsum(fg_sorted, axis=1)
    gts = cum_fg[:, -1:]                                    # (C, 1) per-class fg count
    intersection = gts - cum_fg
    union = gts + jnp.cumsum(1.0 - fg_sorted, axis=1)
    jaccard = 1.0 - intersection / jnp.maximum(union, 1e-12)
    grad = jnp.concatenate([jaccard[:, :1], jaccard[:, 1:] - jaccard[:, :-1]],
                           axis=1)
    per_class = jnp.sum(err_sorted * grad, axis=1)          # (C,)
    present = (gts[:, 0] > 0).astype(jnp.float32)
    lovasz = jnp.sum(per_class * present) / jnp.maximum(jnp.sum(present), 1.0)

    amax_nhw = amax.reshape(N, P_pad)[:, :H * W].reshape(N, H, W)
    return lovasz, ce_loss, amax_nhw


def edge_head_loss(logits_nchw, labels_nhw):
    """F.cross_entropy(logits, labels, weight=[w_neg,w_pos], ignore_index=255)
    with weights derived from pos/neg pixel counts, plus per-pixel edge argmax,
    from one fused pass over the 2-class edge logits."""
    N, C, H, W = logits_nchw.shape
    assert C == 2
    logits, labels, TP, P_pad = _prep(logits_nchw, labels_nhw)
    npt = P_pad // TP
    G = N * npt
    Q = N * P_pad

    amax, parts = pl.pallas_call(
        _edge_fused_kernel,
        out_shape=(jax.ShapeDtypeStruct((1, Q), jnp.int32),
                   jax.ShapeDtypeStruct((1, G * 128), jnp.float32)),
        grid=(N, npt),
        in_specs=[pl.BlockSpec((None, C, TP), lambda n, p: (n, 0, p)),
                  pl.BlockSpec((None, 1, TP), lambda n, p: (n, 0, p))],
        out_specs=(pl.BlockSpec((1, TP), lambda n, p: (0, n * npt + p)),
                   pl.BlockSpec((1, 128), lambda n, p: (0, n * npt + p))),
        compiler_params=pltpu.CompilerParams(
            dimension_semantics=("parallel", "parallel"),
            vmem_limit_bytes=_VMEM_LIMIT),
    )(logits, labels)

    parts = parts.reshape(G, 128)
    neg_cnt = jnp.sum(parts[:, 0])
    pos_cnt = jnp.sum(parts[:, 1])
    neg_ce = jnp.sum(parts[:, 2])
    pos_ce = jnp.sum(parts[:, 3])
    tot = jnp.maximum(pos_cnt + neg_cnt, 1.0)
    weight_pos = neg_cnt / tot           # == neg_num / (pos_num + neg_num)
    weight_neg = pos_cnt / tot           # == pos_num / (pos_num + neg_num)
    denom = weight_neg * neg_cnt + weight_pos * pos_cnt
    # NOTE: all-ignored / single-class labels give denom==0 (NaN in PyTorch); ~0 here.
    ce = (weight_neg * neg_ce + weight_pos * pos_ce) / jnp.maximum(denom, 1e-12)

    amax_nhw = amax.reshape(N, P_pad)[:, :H * W].reshape(N, H, W)
    return ce, amax_nhw


# ----------------------------------------------------------------------------
# Consistency loss (plain JAX; consumes kernel-produced argmaxes, so the
# (N,C,H,W) logits are never re-read from HBM)
# ----------------------------------------------------------------------------
def _generate_edge(label_nhw):
    lab = label_nhw
    edge = jnp.zeros(lab.shape, jnp.float32)

    def neq(a, b):
        return ((a != b) & (a != IGNORE) & (b != IGNORE)).astype(jnp.float32)

    edge = edge.at[:, 1:, :].max(neq(lab[:, 1:, :], lab[:, :-1, :]))
    edge = edge.at[:, :, :-1].max(neq(lab[:, :, :-1], lab[:, :, 1:]))
    edge = edge.at[:, :-1, :-1].max(neq(lab[:, :-1, :-1], lab[:, 1:, 1:]))
    edge = edge.at[:, :-1, 1:].max(neq(lab[:, :-1, 1:], lab[:, 1:, :-1]))
    # 3x3 ones-conv followed by (!=0) == 3x3 max dilation with SAME padding.
    # TODO(synk): edge dilation left in plain JAX (no clean Pallas win).
    edge = lax.reduce_window(edge, -jnp.inf, lax.max, (1, 3, 3), (1, 1, 1), "SAME")
    return jnp.where(edge > 0, 1.0, 0.0)


def consistency_loss(parsing_argmax_nhw, edge_argmax_nhw, label_nhw):
    parsing_pre = jnp.where(label_nhw == IGNORE, IGNORE, parsing_argmax_nhw)
    gen_edge = _generate_edge(parsing_pre)
    edge_pre = edge_argmax_nhw.astype(jnp.float32)
    valid = label_nhw != IGNORE
    pos_union = (gen_edge == 1.0) & (edge_pre == 1.0) & valid
    d = gen_edge - edge_pre
    sl1 = jnp.where(jnp.abs(d) < 1.0, 0.5 * d * d, jnp.abs(d) - 0.5)
    cnt = jnp.sum(pos_union.astype(jnp.float32))
    # PyTorch smooth_l1 mean over an empty selection is NaN; return 0 instead.
    return jnp.where(cnt > 0,
                     jnp.sum(sl1 * pos_union.astype(jnp.float32)) / jnp.maximum(cnt, 1.0),
                     0.0)


# ----------------------------------------------------------------------------
# CriterionAll.forward
# ----------------------------------------------------------------------------
def criterion_all_forward(preds, target, cycle_n=None,
                          lambda_1=1.0, lambda_2=1.0, lambda_3=1.0,
                          num_classes=20):
    preds_parsing, preds_edge = preds
    parsing_label, edge_label, soft_parsing, soft_edge = target
    assert soft_parsing is None and soft_edge is None, \
        "only the cycle_n=None (no self-correction) path is implemented"

    loss_seg = jnp.float32(0.0)
    parsing_argmaxes = []
    for pred_parsing in preds_parsing:
        # bilinear align_corners interpolate to the same (h, w) is the identity
        lovasz, ce, amax = parsing_head_losses(pred_parsing, parsing_label)
        loss_seg = loss_seg + 0.5 * lambda_1 * (lovasz + ce)
        parsing_argmaxes.append(amax)

    loss_edge = jnp.float32(0.0)
    edge_argmax0 = None
    for i, pred_edge in enumerate(preds_edge):
        ce_e, amax_e = edge_head_loss(pred_edge, edge_label)
        loss_edge = loss_edge + lambda_2 * ce_e
        if i == 0:
            edge_argmax0 = amax_e

    loss_cons = jnp.float32(0.0)
    for amax in parsing_argmaxes:
        loss_cons = loss_cons + lambda_3 * consistency_loss(
            amax, edge_argmax0, parsing_label)

    loss = loss_seg + loss_edge + loss_cons
    return loss, loss_seg, loss_edge, loss_cons


if __name__ == "__main__":
    key = jax.random.PRNGKey(0)
    N, C, H, W = 2, 20, 16, 16
    k1, k2, k3, k4, k5 = jax.random.split(key, 5)

    parsing1 = jax.random.normal(k1, (N, C, H, W), jnp.float32)
    parsing2 = jax.random.normal(k2, (N, C, H, W), jnp.float32)
    edge_pred = jax.random.normal(k3, (N, 2, H, W), jnp.float32)

    parsing_label = jax.random.randint(k4, (N, H, W), 0, C).astype(jnp.int32)
    edge_label = jax.random.randint(k5, (N, H, W), 0, 2).astype(jnp.int32)
    # some ignored pixels
    parsing_label = parsing_label.at[:, 0, :].set(IGNORE)
    edge_label = edge_label.at[:, 0, :].set(IGNORE)

    preds = [[parsing1, parsing2], [edge_pred]]
    target = [parsing_label, edge_label, None, None]

    out = criterion_all_forward(preds, target, cycle_n=None)
    jax.block_until_ready(out)
    print("KERNEL_OK")
</pallas_src>

<mosaic_0001>
module attributes {stable_mosaic.version = 11 : i64} {
  func.func @_parsing_fused_kernel(%arg0: i32, %arg1: i32, %arg2: memref<1x20x256xf32, #tpu.memory_space<vmem>>, %arg3: memref<1x1x256xi32, #tpu.memory_space<vmem>>, %arg4: memref<20x256xi32, #tpu.memory_space<vmem>>, %arg5: memref<1x256xi32, #tpu.memory_space<vmem>>, %arg6: memref<1x128xf32, #tpu.memory_space<vmem>>) attributes {dimension_semantics = [#tpu.dimension_semantics<parallel>, #tpu.dimension_semantics<parallel>], iteration_bounds = array<i64: 2, 1>, scalar_prefetch = 0 : i64, scratch_operands = 0 : i64, tpu.core_type = #tpu.core_type<tc>, window_params = [{transform_indices = @transform_0, window_bounds = array<i64: 1, 20, 256>}, {transform_indices = @transform_1, window_bounds = array<i64: 1, 1, 256>}, {transform_indices = @transform_2, window_bounds = array<i64: 20, 256>}, {transform_indices = @transform_3, window_bounds = array<i64: 1, 256>}, {transform_indices = @transform_4, window_bounds = array<i64: 1, 128>}]} {
    %c0 = arith.constant 0 : index
    %c0_0 = arith.constant 0 : index
    %c0_1 = arith.constant 0 : index
    %0 = vector.load %arg2[%c0, %c0_0, %c0_1] : memref<1x20x256xf32, #tpu.memory_space<vmem>>, vector<1x20x256xf32>
    %1 = vector.shape_cast %0 : vector<1x20x256xf32> to vector<20x256xf32>
    %c0_2 = arith.constant 0 : index
    %c0_3 = arith.constant 0 : index
    %c0_4 = arith.constant 0 : index
    %2 = vector.load %arg3[%c0_2, %c0_3, %c0_4] : memref<1x1x256xi32, #tpu.memory_space<vmem>>, vector<1x1x256xi32>
    %3 = vector.shape_cast %2 : vector<1x1x256xi32> to vector<1x256xi32>
    %cst = arith.constant dense<0xFF800000> : vector<256xf32>
    %4 = vector.multi_reduction <maximumf>, %1, %cst [0] : vector<20x256xf32> to vector<256xf32>
    %5 = vector.shape_cast %4 : vector<256xf32> to vector<1x256xf32>
    %6 = vector.broadcast %5 : vector<1x256xf32> to vector<20x256xf32>
    %7 = arith.subf %1, %6 : vector<20x256xf32>
    %8 = math.exp %7 : vector<20x256xf32>
    %cst_5 = arith.constant dense<0.000000e+00> : vector<256xf32>
    %9 = vector.multi_reduction <add>, %8, %cst_5 [0] : vector<20x256xf32> to vector<256xf32>
    %10 = vector.shape_cast %9 : vector<256xf32> to vector<1x256xf32>
    %11 = tpu.reciprocal %10 : vector<1x256xf32> -> vector<1x256xf32>
    %12 = math.log %10 : vector<1x256xf32>
    %13 = arith.addf %12, %5 : vector<1x256xf32>
    %c255_i32 = arith.constant 255 : i32
    %14 = vector.broadcast %c255_i32 : i32 to vector<1x256xi32>
    %15 = arith.cmpi ne, %3, %14 : vector<1x256xi32>
    %16 = arith.extui %15 : vector<1x256xi1> to vector<1x256xi32>
    %17 = arith.sitofp %16 : vector<1x256xi32> to vector<1x256xf32>
    %c0_i32 = arith.constant 0 : i32
    %18 = vector.broadcast %c0_i32 : i32 to vector<1x256xi32>
    %19 = arith.select %15, %3, %18 : vector<1x256xi1>, vector<1x256xi32>
    %20 = tpu.iota {dimensions = array<i32: 0>} : vector<20x256xi32>
    %21 = vector.broadcast %19 : vector<1x256xi32> to vector<20x256xi32>
    %22 = arith.cmpi eq, %20, %21 : vector<20x256xi32>
    %23 = vector.broadcast %15 : vector<1x256xi1> to vector<20x256xi1>
    %24 = arith.andi %22, %23 : vector<20x256xi1>
    %25 = vector.shape_cast %17 : vector<1x256xf32> to vector<1x256xf32>
    %26 = vector.broadcast %25 : vector<1x256xf32> to vector<20x256xf32>
    %27 = vector.shape_cast %11 : vector<1x256xf32> to vector<1x256xf32>
    %28 = vector.broadcast %27 : vector<1x256xf32> to vector<20x256xf32>
    %29 = arith.mulf %8, %28 : vector<20x256xf32>
    %cst_6 = arith.constant 0.000000e+00 : f32
    %30 = vector.broadcast %cst_6 : f32 to vector<20x256xf32>
    %31 = arith.select %24, %1, %30 : vector<20x256xi1>, vector<20x256xf32>
    %cst_7 = arith.constant dense<0.000000e+00> : vector<256xf32>
    %32 = vector.multi_reduction <add>, %31, %cst_7 [0] : vector<20x256xf32> to vector<256xf32>
    %33 = vector.shape_cast %32 : vector<256xf32> to vector<1x256xf32>
    %34 = arith.subf %13, %33 : vector<1x256xf32>
    %35 = arith.mulf %34, %17 : vector<1x256xf32>
    %36 = vector.shape_cast %35 : vector<1x256xf32> to vector<1x1x256xf32>
    %cst_8 = arith.constant dense<0.000000e+00> : vector<1xf32>
    %37 = vector.multi_reduction <add>, %36, %cst_8 [1, 2] : vector<1x1x256xf32> to vector<1xf32>
    %38 = vector.shape_cast %37 : vector<1xf32> to vector<1x1x1xf32>
    %39 = vector.extract %38[0, 0, 0] : f32 from vector<1x1x1xf32>
    %40 = vector.broadcast %39 : f32 to vector<1x1xf32>
    %41 = vector.shape_cast %17 : vector<1x256xf32> to vector<1x1x256xf32>
    %cst_9 = arith.constant dense<0.000000e+00> : vector<1xf32>
    %42 = vector.multi_reduction <add>, %41, %cst_9 [1, 2] : vector<1x1x256xf32> to vector<1xf32>
    %43 = vector.shape_cast %42 : vector<1xf32> to vector<1x1x1xf32>
    %44 = vector.extract %43[0, 0, 0] : f32 from vector<1x1x1xf32>
    %45 = vector.broadcast %44 : f32 to vector<1x1xf32>
    %46 = arith.extui %24 : vector<20x256xi1> to vector<20x256xi32>
    %47 = arith.sitofp %46 : vector<20x256xi32> to vector<20x256xf32>
    %48 = arith.subf %47, %29 : vector<20x256xf32>
    %49 = math.absf %48 : vector<20x256xf32>
    %50 = arith.mulf %49, %26 : vector<20x256xf32>
    %51 = tpu.bitcast %50 : vector<20x256xf32> -> vector<20x256xi32>
    %c-2_i32 = arith.constant -2 : i32
    %52 = vector.broadcast %c-2_i32 : i32 to vector<20x256xi32>
    %53 = arith.andi %51, %52 : vector<20x256xi32>
    %54 = arith.extui %24 : vector<20x256xi1> to vector<20x256xi32>
    %55 = arith.ori %53, %54 : vector<20x256xi32>
    %c0_10 = arith.constant 0 : index
    %c0_11 = arith.constant 0 : index
    %56 = vector.load %arg4[%c0_10, %c0_11] : memref<20x256xi32, #tpu.memory_space<vmem>>, vector<20x256xi32>
    tpu.vector_store %arg4[%c0_10, %c0_11], %55 {strides = array<i32>} : memref<20x256xi32, #tpu.memory_space<vmem>>, vector<20x256xi32>,
    %57 = vector.broadcast %5 : vector<1x256xf32> to vector<20x256xf32>
    %58 = arith.cmpf oeq, %1, %57 : vector<20x256xf32>
    %c20_i32 = arith.constant 20 : i32
    %59 = vector.broadcast %c20_i32 : i32 to vector<20x256xi32>
    %60 = arith.select %58, %20, %59 : vector<20x256xi1>, vector<20x256xi32>
    %cst_12 = arith.constant dense<2147483647> : vector<256xi32>
    %61 = vector.multi_reduction <minsi>, %60, %cst_12 [0] : vector<20x256xi32> to vector<256xi32>
    %62 = vector.shape_cast %61 : vector<256xi32> to vector<1x256xi32>
    %c0_13 = arith.constant 0 : index
    %c0_14 = arith.constant 0 : index
    %63 = vector.load %arg5[%c0_13, %c0_14] : memref<1x256xi32, #tpu.memory_space<vmem>>, vector<1x256xi32>
    tpu.vector_store %arg5[%c0_13, %c0_14], %62 {strides = array<i32>} : memref<1x256xi32, #tpu.memory_space<vmem>>, vector<1x256xi32>,
    %64 = tpu.iota {dimensions = array<i32: 1>} : vector<1x128xi32>
    %c0_i32_15 = arith.constant 0 : i32
    %65 = vector.broadcast %c0_i32_15 : i32 to vector<1x128xi32>
    %66 = arith.cmpi eq, %64, %65 : vector<1x128xi32>
    %c1_i32 = arith.constant 1 : i32
    %67 = vector.broadcast %c1_i32 : i32 to vector<1x128xi32>
    %68 = arith.cmpi eq, %64, %67 : vector<1x128xi32>
    %cst_16 = arith.constant 0.000000e+00 : f32
    %69 = vector.shape_cast %45 : vector<1x1xf32> to vector<1x1xf32>
    %70 = vector.broadcast %69 : vector<1x1xf32> to vector<1x128xf32>
    %71 = vector.broadcast %cst_16 : f32 to vector<1x128xf32>
    %72 = arith.select %68, %70, %71 : vector<1x128xi1>, vector<1x128xf32>
    %73 = vector.shape_cast %40 : vector<1x1xf32> to vector<1x1xf32>
    %74 = vector.broadcast %73 : vector<1x1xf32> to vector<1x128xf32>
    %75 = arith.select %66, %74, %72 : vector<1x128xi1>, vector<1x128xf32>
    %c0_17 = arith.constant 0 : index
    %c0_18 = arith.constant 0 : index
    %76 = vector.load %arg6[%c0_17, %c0_18] : memref<1x128xf32, #tpu.memory_space<vmem>>, vector<1x128xf32>
    tpu.vector_store %arg6[%c0_17, %c0_18], %75 {strides = array<i32>} : memref<1x128xf32, #tpu.memory_space<vmem>>, vector<1x128xf32>,
    return
  }
  func.func @transform_0(%arg0: i32, %arg1: i32) -> (i32, i32, i32) {
    %c0_i32 = arith.constant 0 : i32
    %c0_i32_0 = arith.constant 0 : i32
    return %arg0, %c0_i32, %arg1 : i32, i32, i32
  }
  func.func @transform_1(%arg0: i32, %arg1: i32) -> (i32, i32, i32) {
    %c0_i32 = arith.constant 0 : i32
    %c0_i32_0 = arith.constant 0 : i32
    return %arg0, %c0_i32, %arg1 : i32, i32, i32
  }
  func.func @transform_2(%arg0: i32, %arg1: i32) -> (i32, i32) {
    %c1_i32 = arith.constant 1 : i32
    %0 = arith.muli %arg0, %c1_i32 : i32
    %1 = arith.addi %0, %arg1 : i32
    %c0_i32 = arith.constant 0 : i32
    %c0_i32_0 = arith.constant 0 : i32
    return %c0_i32, %1 : i32, i32
  }
  func.func @transform_3(%arg0: i32, %arg1: i32) -> (i32, i32) {
    %c1_i32 = arith.constant 1 : i32
    %0 = arith.muli %arg0, %c1_i32 : i32
    %1 = arith.addi %0, %arg1 : i32
    %c0_i32 = arith.constant 0 : i32
    %c0_i32_0 = arith.constant 0 : i32
    return %c0_i32, %1 : i32, i32
  }
  func.func @transform_4(%arg0: i32, %arg1: i32) -> (i32, i32) {
    %c1_i32 = arith.constant 1 : i32
    %0 = arith.muli %arg0, %c1_i32 : i32
    %1 = arith.addi %0, %arg1 : i32
    %c0_i32 = arith.constant 0 : i32
    %c0_i32_0 = arith.constant 0 : i32
    return %c0_i32, %1 : i32, i32
  }
}

</mosaic_0001>

<bundles_post_ra>
// kernel: tpu_custom_call.1
= control target key start
LH: loop header
LB: loop body
LE: loop exit
PB: predicated region body
PF: predicated region fallthrough
CT: control target
= control target key end

     0   :  { %10 = vsyncpa [#allocation3], 0  ;;  %s1486_s0 = inlined_call_operand.vmem [shape: f32[2,20,256], index: 0, kind: input, shape index: {}]   ;;  %s1487_s1 = inlined_call_operand.vmem [shape: s32[2,1,256], index: 1, kind: input, shape index: {}]   ;;  %s1488_s2 = inlined_call_operand.hbm [shape: s32[20,512], index: 2, kind: output, shape index: {0}]   ;;  %s1489_s3 = inlined_call_operand.hbm [shape: s32[1,512], index: 3, kind: output, shape index: {1}]   ;;  %s1490_s4 = inlined_call_operand.hbm [shape: f32[1,256], index: 4, kind: output, shape index: {2}]  }
   0x1   :  { %12 = vsyncpa [#allocation3 + $0x1], 0 }
   0x2   :  { %13 = vsyncpa [#allocation5], 0 }
   0x3   :  { %15 = vsyncpa [#allocation5 + $0x1], 0  ;;  %s1076_s15 = smov 0   ;;  %s1078_s16 = smov 0  }
   0x4   :  { %s1080_s17 = smov 0   ;;  %s1082_s18 = smov 0  }
   0x5   :  { %s1084_s19 = smov 0   ;;  %s1086_s20 = smov 0  }
   0x6 LB: > { %s788_s21 = sadd.s32 4294967295, %s1044_s20   ;;  %s1491_s22 = sadd.s32 4294967294, %s1044_s20   ;;  %s1044_s20 = sphi %s1086_s20, %s21_s20   ;;  %s1040_s19 = sphi %s1084_s19, %s1519_s19   ;;  %s1036_s18 = sphi %s1082_s18, %s1518_s18   ;;  %s1032_s17 = sphi %s1080_s17, %s1517_s17   ;;  %s1028_s16 = sphi %s1078_s16, %s1516_s16   ;;  %s1024_s15 = sphi %s1076_s15, %s1515_s15  }
   0x7   : > { %s33_s23 = sadd.s32 1, %s1040_s19  ;;  %s98_s24 = sadd.s32 1, %s1032_s17 }
   0x8   : > { %p35_p0 = scmp.ge.s32.totalorder %s33_s23, 2  ;;  %p108_p1 = scmp.ne.s32.totalorder %s1032_s17, %s1028_s16 }
   0x9   : > { %p109_p2 = scmp.eq.s32.totalorder %s788_s21, 1  ;;  %p114_p3 = scmp.ne.s32.totalorder %s1028_s16, %s1024_s15 }
   0xa   : > { %s1521_s23 = smov (%p35_p0, %s33_s23), 0  ;;  %p115_p5 = scmp.eq.s32.totalorder %s1491_s22, 1 }
   0xb   : > { %p1118_p4 = por %p109_p2, %p108_p1  ;;  %s95_s26 = ssub.s32 %s1040_s19, %s1521_s23 }
   0xc   : > { %p792_p6 = scmp.ge.s32.totalorder %s1044_s20, 1  ;;  %p96_p7 = scmp.eq.s32.totalorder %s95_s26, 0 }
   0xd   : > { %p1127_p8 = por %p115_p5, %p114_p3  ;;  %p214_p9 = scmp.lt.s32.totalorder %s1044_s20, 3 }
   0xe   : > { %s1133_s28 = scalar_select %p96_p7, %s1032_s17, %s98_s24  }
   0xf   : > { %p215_p10 = pnand %p792_p6, %p214_p9 }
  0x10   : > { %p262_p11 = scmp.lt.s32.totalorder (!%p215_p10), %s1036_s18, 1  ;;  %s1382_s12 = sand.u32 (!%p215_p10), 1, %s1028_s16  }
  0x11   : > { %218 = sbr.rel (%p215_p10) target bundleno = 288 (0x120), region = 28  ;;  %s809_s26 = sshll.u32 (!%p215_p10), %s1036_s18, 4 }
  0x12   : > { %s810_s13 = smul.u32 (!%p215_p10), 48, %s1382_s12  ;;  %s582_s7 = scalar_lea.sflag (!%p215_p10), [#allocation3], %s1382_s12 }
  0x14   : > { %s247_s14 = scalar_lea.vmem (!%p215_p10), [#allocation2], %s810_s13  ;;  %s926_s13 = scalar_lea.hbm (!%p215_p10), %s1488_s2, 96 }
  0x15   : > { %s604_s24 = sshll.u32 (!%p215_p10), %s247_s14, 4  ;;  %s605_s24 = int_to_ptr.vmem [resolvable:$true] %s604_s24 }
  0x16   : > { %s263_s29 = scalar_select %p262_p11, %s1036_s18, 1  ;;  %vm292_vm0 = vcmask 1043456   ;;  %v385_v13 = vlaneseq  ;;  %v1046_v16 = vmov 0  }
  0x18   : > { %s811_s30 = smul.u32 48, %s263_s29  ;;  %s795_s5 = sshll.u32 %s263_s29, 1  ;;  %v1173_v21 = vshrl.u32 %v385_v13, 7 }
  0x19   : > { %s278_s11 = scalar_lea.vmem %s1487_s1, %s795_s5  ;;  %s603_s5 = scalar_lea.hbm %s1488_s2, %s809_s26 }
  0x1a   : > { %s269_s8 = scalar_lea.vmem %s1486_s0, %s811_s30  ;;  %v1161_v10 = vld [vmem:[%s278_s11] sm:$0x3]  ;;  %v1176_v30 = vadd.s32 8, %v1173_v21  ;;  %v1179_v31 = vadd.s32 16, %v1173_v21  ;;  %s606_s6 = sshll.u32 %s603_s5, 4  ;;  %s607_s6 = int_to_ptr.hbm [resolvable:$true] %s606_s6 }
  0x1b   : > { %v1140_v0 = vld [vmem:[%s269_s8] sm:$0xff]  ;;  %v1142_v1 = vld [vmem:[%s269_s8 + $0x8] sm:$0xff]  ;;  %v1151_v4 = vld [vmem:[%s269_s8 + $0x10] sm:$0xff]  ;;  %vm381_vm1 = vcmp.ne.s32.totalorder %v1161_v10, 255 }
  0x1c   : > { %v1147_v2 = vld [vmem:[%s269_s8 + $0x20] sm:$0xf]  ;;  %v1149_v3 = vld [vmem:[%s269_s8 + $0x28] sm:$0xf]  ;;  %v1153_v5 = vld [vmem:[%s269_s8 + $0x18] sm:$0xff]  ;;  %v382_v17 = vsel %vm381_vm1, 1, %v1046_v16 }
  0x1d   : > { %v293_v6 = vsel %vm292_vm0, %v1147_v2, -inf  ;;  %v302_v7 = vsel %vm292_vm0, %v1149_v3, -inf  ;;  %v384_v18 = vsel %vm381_vm1, %v1161_v10, 0  ;;  %v397_v25 = vperm.slane %v382_v17, 0  ;;  %s920_s8 = sshra.s32 %s607_s6, 4  ;;  %s921_s8 = int_to_ptr.hbm [resolvable:$true] %s920_s8 }
  0x1e   : > { %v294_v8 = vmax.f32 %v1140_v0, %v293_v6  ;;  %v303_v9 = vmax.f32 %v1142_v1, %v302_v7  ;;  %v389_v24 = vperm.slane %v384_v18, 0  ;;  %v390_v26 = vperm.slane %v384_v18, 1  ;;  %s922_s9 = scalar_lea.hbm %s921_s8, 48  ;;  %p927_p1 = scmp.lt.s32.totalorder %s921_s8, %s1488_s2 }
  0x1f   : > { %v398_v27 = vperm.slane %v382_v17, 1  ;;  %vm1182_vm3 = vcmp.eq.s32.totalorder %v397_v25, 1  ;;  %p923_p12 = scmp.ne.s32.totalorder %s921_s8, %s922_s9  ;;  %p928_p2 = scmp.lt.s32.totalorder %s926_s13, %s922_s9 }
  0x20   : > { %v295_v11 = vmax.f32 %v294_v8, %v1151_v4  ;;  %v304_v12 = vmax.f32 %v303_v9, %v1153_v5  ;;  %vm391_vm2 = vcmp.eq.s32.totalorder %v1173_v21, %v389_v24  ;;  %vm392_vm4 = vcmp.eq.s32.totalorder %v1173_v21, %v390_v26 }
  0x21   : > { %vm1187_vm5 = vcmp.eq.s32.totalorder %v398_v27, 1  ;;  %vm393_vm6 = vcmp.eq.s32.totalorder %v1176_v30, %v389_v24  ;;  %vm394_vm7 = vcmp.eq.s32.totalorder %v1176_v30, %v390_v26  ;;  %vm395_vm8 = vcmp.eq.s32.totalorder %v1179_v31, %v389_v24  ;;  %vm1200_vm9 = vmand %vm391_vm2, %vm1182_vm3  ;;  %p924_p13 = pnand %p923_p12, %p1118_p4  ;;  %p929_p3 = por %p928_p2, %p927_p1 }
  0x22   : > { %v296_v14 = vrot.slane %v295_v11, 4  ;;  %v305_v15 = vrot.slane %v304_v12, 4  ;;  %vm1214_vm10 = vmand %vm392_vm4, %vm1187_vm5  ;;  %vm396_vm11 = vcmp.eq.s32.totalorder %v1179_v31, %v390_v26  ;;  %v418_v56 = vsel %vm1200_vm9, %v1140_v0, 0.0 }
  0x23   : > { %vm1225_vm12 = vmand %vm393_vm6, %vm1182_vm3  ;;  %v419_v57 = vsel %vm1214_vm10, %v1142_v1, 0.0  ;;  %v1294_v25 = vsel %vm1200_vm9, 1, %v1046_v16  ;;  %v1299_v26 = vsel %vm1214_vm10, 1, %v1046_v16  ;;  %p925_p0 = pneg %p924_p13 }
  0x24   : > { %v297_v19 = vmax.f32 %v295_v11, %v296_v14  ;;  %v306_v20 = vmax.f32 %v304_v12, %v305_v15  ;;  %vm1233_vm13 = vmand %vm394_vm7, %vm1187_vm5  ;;  %v420_v58 = vsel %vm1225_vm12, %v1151_v4, 0.0 }
  0x25   : > { %vm1241_vm14 = vmand %vm395_vm8, %vm1182_vm3  ;;  %v421_v59 = vsel %vm1233_vm13, %v1153_v5, 0.0  ;;  %v424_v62 = vadd.f32 %v420_v58, %v418_v56  ;;  %v1309_v34 = vsel %vm1233_vm13, 1, %v1046_v16  ;;  %p930_p5 = pnand %p929_p3, %p925_p0 }
  0x26   : > { %v298_v22 = vrot.slane %v297_v19, 2  ;;  %v307_v23 = vrot.slane %v306_v20, 2  ;;  %vm1247_vm15 = vmand %vm396_vm11, %vm1187_vm5  ;;  %v422_v60 = vsel %vm1241_vm14, %v1147_v2, 0.0  ;;  %v433_v63 = vadd.f32 %v421_v59, %v419_v57 }
  0x27   : > { %v423_v61 = vsel %vm1247_vm15, %v1149_v3, 0.0  ;;  %v425_v7 = vsel %vm292_vm0, %v422_v60, 0.0  ;;  %v1314_v35 = vsel %vm1241_vm14, 1, %v1046_v16 }
  0x28   : > { %v299_v28 = vmax.f32 %v297_v19, %v298_v22  ;;  %v308_v29 = vmax.f32 %v306_v20, %v307_v23  ;;  %v434_v8 = vsel %vm292_vm0, %v423_v61, 0.0  ;;  %v426_v15 = vadd.f32 %v425_v7, %v424_v62 }
  0x29   : > { %v435_v17 = vadd.f32 %v434_v8, %v433_v63  ;;  %v1047_v63 = vmov 0.0  }
  0x2a   : > { %v300_v32 = vrot.slane %v299_v28, 1  ;;  %v309_v33 = vrot.slane %v308_v29, 1  ;;  %v796_v7 = vsel %vm381_vm1, 1.0, %v1047_v63  ;;  %vm446_vm1 = vcmask 1040384  }
  0x2b   : > { %v802_v43 = vsel %vm1247_vm15, 1.0, %v1047_v63 }
  0x2c   : > { %v1191_v36 = vmax.f32 %v299_v28, %v300_v32  ;;  %v1193_v37 = vmax.f32 %v308_v29, %v309_v33  ;;  %v427_v28 = vrot.slane %v426_v15, 4  ;;  %v436_v29 = vrot.slane %v435_v17, 4 }
  0x2d   : > { %v1304_v32 = vsel %vm1225_vm12, 1, %v1046_v16 }
  0x2e   : > { %v311_v39 = vsub.f32 %v1140_v0, %v1191_v36  ;;  %v312_v40 = vsub.f32 %v1142_v1, %v1193_v37  ;;  %v313_v41 = vsub.f32 %v1151_v4, %v1191_v36  ;;  %v314_v42 = vsub.f32 %v1153_v5, %v1193_v37 }
  0x2f   : > { %v315_v44 = vsub.f32 %v1147_v2, %v1191_v36  ;;  %v316_v45 = vsub.f32 %v1149_v3, %v1193_v37 }
  0x30   : > { %v317_v47 = vmul.f32 1.442695, %v311_v39  ;;  %v319_v48 = vmul.f32 1.442695, %v312_v40  ;;  %v321_v49 = vmul.f32 1.442695, %v313_v41 }
  0x31   : > { %v323_v51 = vmul.f32 1.442695, %v314_v42  ;;  %v325_v53 = vmul.f32 1.442695, %v315_v44  ;;  %v327_v55 = vmul.f32 1.442695, %v316_v45  ;;  %v428_v44 = vadd.f32 %v427_v28, %v426_v15 }
  0x32   : > { %886 = vpow2.f32 %v317_v47  ;;  %v1319_v39 = vsel %vm1247_vm15, 1, %v1046_v16  ;;  %v437_v47 = vadd.f32 %v436_v29, %v435_v17 }
  0x33   : > { %888 = vpow2.f32 %v319_v48 }
  0x34   : > { %890 = vpow2.f32 %v321_v49  ;;  %v438_v56 = vrot.slane %v437_v47, 2 }
  0x35   : > { %892 = vpow2.f32 %v323_v51 }
  0x36   : > { %894 = vpow2.f32 %v325_v53  ;;  %v429_v53 = vrot.slane %v428_v44, 2  ;;  %v439_v61 = vadd.f32 %v438_v56, %v437_v47 }
  0x37   : > { %896 = vpow2.f32 %v327_v55 }
  0x38   : > { %v1269_v6 = vpop.eup %886  ;;  %v430_v60 = vadd.f32 %v429_v53, %v428_v44  ;;  %v440_v62 = vrot.slane %v439_v61, 1 }
  0x39   : > { %v1273_v9 = vpop.eup %888 }
  0x3a   : > { %v1275_v11 = vpop.eup %890  ;;  %v431_v16 = vrot.slane %v430_v60, 1 }
  0x3b   : > { %v1277_v12 = vpop.eup %892  ;;  %v329_v14 = vadd.f32 %v1275_v11, %v1269_v6 }
  0x3c   : > { %v1281_v18 = vpop.eup %894  ;;  %v338_v19 = vadd.f32 %v1277_v12, %v1273_v9  ;;  %v432_v17 = vadd.f32 %v431_v16, %v430_v60 }
  0x3d   : > { %v1285_v20 = vpop.eup %896  ;;  %v330_v22 = vsel %vm292_vm0, %v1281_v18, 0.0 }
  0x3e   : > { %v331_v23 = vadd.f32 %v330_v22, %v329_v14  ;;  %v339_v24 = vsel %vm292_vm0, %v1285_v20, 0.0 }
  0x3f   : > { %v340_v27 = vadd.f32 %v339_v24, %v338_v19  ;;  %v1325_v24 = vperm.slane %v796_v7, 1 }
  0x40   : > { %v332_v33 = vrot.slane %v331_v23, 4 }
  0x41   : > { %v341_v40 = vrot.slane %v340_v27, 4  ;;  %v460_v52 = vsel %vm446_vm1, %v1325_v24, 0.0 }
  0x42   : > { %v333_v41 = vadd.f32 %v332_v33, %v331_v23  ;;  %v1323_v23 = vperm.slane %v796_v7, 0  ;;  %v797_v7 = vsel %vm1200_vm9, 1.0, %v1047_v63 }
  0x43   : > { %v342_v42 = vadd.f32 %v341_v40, %v340_v27  ;;  %v441_v27 = vadd.f32 %v440_v62, %v439_v61 }
  0x44   : > { %v334_v45 = vrot.slane %v333_v41, 2  ;;  %v459_v54 = vsel %vm446_vm1, %v1323_v23, 0.0 }
  0x45   : > { %v343_v48 = vrot.slane %v342_v42, 2 }
  0x46   : > { %v335_v49 = vadd.f32 %v334_v45, %v333_v41 }
  0x47   : > { %v344_v51 = vadd.f32 %v343_v48, %v342_v42 }
  0x48   : > { %v336_v55 = vrot.slane %v335_v49, 1 }
  0x49   : > { %v345_v57 = vrot.slane %v344_v51, 1 }
  0x4a   : > { %v337_v58 = vadd.f32 %v336_v55, %v335_v49 }
  0x4b   : > { %v346_v59 = vadd.f32 %v345_v57, %v344_v51 }
  0x4c   : > { %898 = vlog2.f32 %v337_v58  ;;  %vm352_vm4 = vweird.f32 %v337_v58  ;;  %v356_v49 = vand.u32 2147483647, %v337_v58  ;;  %v358_v51 = vand.u32 2147483648, %v337_v58 }
  0x4d   : > { %900 = vrcp.f32 %v346_v59  ;;  %vm366_vm2 = vweird.f32 %v346_v59  ;;  %v372_v29 = vand.u32 2147483648, %v346_v59  ;;  %v370_v10 = vand.u32 2147483647, %v346_v59 }
  0x4e   : > { %902 = vlog2.f32 %v346_v59  ;;  %vm357_vm9 = vcmp.eq.f32.partialorder %v356_v49, 8.507059e+37 }
  0x4f   : > { %904 = vrcp.f32 %v337_v58  ;;  %v373_v55 = vor.u32 1.1754944e-38, %v372_v29  ;;  %vm371_vm7 = vcmp.eq.f32.partialorder %v370_v10, 8.507059e+37 }
  0x52   : > { %v899_v8 = vpop.eup %898 }
  0x53   : > { %v901_v14 = vpop.eup %900  ;;  %v376_v15 = vmul.f32 0.6931472, %v899_v8 }
  0x54   : > { %v903_v19 = vpop.eup %902  ;;  %v362_v22 = vmul.f32 %v901_v14, %v346_v59  ;;  %vm367_vm3 = vweird.f32 %v901_v14  ;;  %v798_v59 = vsel %vm1214_vm10, 1.0, %v1047_v63 }
  0x55   : > { %v905_v28 = vpop.eup %904  ;;  %v378_v33 = vmul.f32 0.6931472, %v903_v19  ;;  %v379_v40 = vadd.f32 %v376_v15, %v1191_v36  ;;  %vm1330_vm5 = vmor %vm366_vm2, %vm367_vm3  ;;  %v800_v15 = vsel %vm1233_vm13, 1.0, %v1047_v63 }
  0x56   : > { %v363_v41 = vsub.f32 1.0, %v362_v22  ;;  %v348_v42 = vmul.f32 %v905_v28, %v337_v58  ;;  %vm353_vm6 = vweird.f32 %v905_v28  ;;  %v359_v22 = vor.u32 1.1754944e-38, %v358_v51 }
  0x57   : > { %v380_v44 = vadd.f32 %v378_v33, %v1193_v37  ;;  %v442_v45 = vsub.f32 %v379_v40, %v432_v17  ;;  %vm1346_vm8 = vmor %vm352_vm4, %vm353_vm6  ;;  %v799_v58 = vsel %vm1225_vm12, 1.0, %v1047_v63  ;;  %v801_v40 = vsel %vm1241_vm14, 1.0, %v1047_v63 }
  0x58   : > { %v364_v47 = vmul.f32 %v901_v14, %v363_v41  ;;  %v349_v48 = vsub.f32 1.0, %v348_v42 }
  0x59   : > { %v443_v56 = vsub.f32 %v380_v44, %v441_v27  ;;  %v444_v57 = vmul.f32 %v442_v45, %v1323_v23 }
  0x5a   : > { %v365_v60 = vadd.f32 %v901_v14, %v364_v47  ;;  %v350_v61 = vmul.f32 %v905_v28, %v349_v48 }
  0x5b   : > { %v445_v16 = vmul.f32 %v443_v56, %v1325_v24  ;;  %v447_v62 = vsel %vm446_vm1, %v444_v57, 0.0 }
  0x5c   : > { %v369_v8 = vsel %vm1330_vm5, %v901_v14, %v365_v60  ;;  %v351_v17 = vadd.f32 %v905_v28, %v350_v61 }
  0x5d   : > { %v374_v27 = vsel %vm371_vm7, %v373_v55, %v369_v8  ;;  %v448_v38 = vsel %vm446_vm1, %v445_v16, 0.0 }
  0x5e   : > { %v413_v29 = vmul.f32 %v1273_v9, %v374_v27  ;;  %v415_v14 = vmul.f32 %v1277_v12, %v374_v27  ;;  %v417_v50 = vmul.f32 %v1285_v20, %v374_v27  ;;  %v449_v33 = vadd.f32 %v448_v38, %v447_v62 }
  0x5f   : > { %v355_v41 = vsel %vm1346_vm8, %v905_v28, %v351_v17 }
  0x60   : > { %v484_v10 = vsub.f32 %v798_v59, %v413_v29  ;;  %v486_v42 = vsub.f32 %v800_v15, %v415_v14  ;;  %v488_v9 = vsub.f32 %v802_v43, %v417_v50  ;;  %450 = vadd.xlane.f32.xlu0 %v449_v33  ;;  %v360_v12 = vsel %vm357_vm9, %v359_v22, %v355_v41 }
  0x61   : > { %v412_v20 = vmul.f32 %v1269_v6, %v360_v12  ;;  %v414_v44 = vmul.f32 %v1275_v11, %v360_v12  ;;  %v416_v46 = vmul.f32 %v1281_v18, %v360_v12  ;;  %v461_v6 = vadd.f32 %v460_v52, %v459_v54 }
  0x62   : > { %v490_v63 = vand.u32 2147483647, %v484_v10  ;;  %v492_v45 = vand.u32 2147483647, %v486_v42  ;;  %v494_v28 = vand.u32 2147483647, %v488_v9 }
  0x63   : > { %v483_v47 = vsub.f32 %v797_v7, %v412_v20  ;;  %v485_v48 = vsub.f32 %v799_v58, %v414_v44  ;;  %v487_v49 = vsub.f32 %v801_v40, %v416_v46 }
  0x64   : > { %v496_v51 = vmul.f32 %v490_v63, %v1325_v24  ;;  %v498_v53 = vmul.f32 %v492_v45, %v1325_v24  ;;  %v500_v55 = vmul.f32 %v494_v28, %v1325_v24 }
  0x65   : > { %v489_v56 = vand.u32 2147483647, %v483_v47  ;;  %v491_v11 = vand.u32 2147483647, %v485_v48  ;;  %v493_v57 = vand.u32 2147483647, %v487_v49 }
  0x66   : > { %v508_v18 = vand.u32 4294967294, %v496_v51  ;;  %v510_v60 = vand.u32 4294967294, %v498_v53  ;;  %v512_v61 = vand.u32 4294967294, %v500_v55 }
  0x67   : > { %v495_v16 = vmul.f32 %v489_v56, %v1323_v23  ;;  %v497_v62 = vmul.f32 %v491_v11, %v1323_v23  ;;  %v499_v7 = vmul.f32 %v493_v57, %v1323_v23 }
  0x68   : > { %v514_v59 = vor.u32 %v508_v18, %v1299_v26  ;;  %v516_v8 = vor.u32 %v510_v60, %v1309_v34  ;;  %v518_v24 = vor.u32 %v512_v61, %v1319_v39  ;;  %462 = vadd.xlane.f32.xlu0 %v461_v6 }
  0x69   : > { %v507_v15 = vand.u32 4294967294, %v495_v16  ;;  %v509_v17 = vand.u32 4294967294, %v497_v62  ;;  %v511_v19 = vand.u32 4294967294, %v499_v7 }
  0x6a   : > { %520 = vst [vmem:[%s247_s14 + $0x8] sm:$0xff] %v514_v59 }
  0x6b   : > { %v513_v22 = vor.u32 %v507_v15, %v1294_v25  ;;  %v515_v27 = vor.u32 %v509_v17, %v1304_v32  ;;  %v517_v38 = vor.u32 %v511_v19, %v1314_v35  ;;  %522 = vst [vmem:[%s247_s14 + $0x18] sm:$0xff] %v516_v8 }
  0x6c   : > { %524 = vst [vmem:[%s247_s14 + $0x28] sm:$0xf] %v518_v24 }
  0x6d   : > { %519 = vst [vmem:[%s247_s14] sm:$0xff] %v513_v22 }
  0x6e   : > { %521 = vst [vmem:[%s247_s14 + $0x10] sm:$0xff] %v515_v27 }
  0x6f   : > { %523 = vst [vmem:[%s247_s14 + $0x20] sm:$0xf] %v517_v38 }
  0x70   : > { %933 = shalt.err (!%p930_p5)
}
  0x71   : > { %s1048_s26 = smov 256   ;;  %s1049_s29 = smov 512   ;;  %vm530_vm10 = vcmp.eq.f32.partialorder %v1149_v3, %v1193_v37  ;;  %vm526_vm11 = vcmp.eq.f32.partialorder %v1142_v1, %v1193_v37  ;;  %vm529_vm12 = vcmp.eq.f32.partialorder %v1147_v2, %v1191_v36  ;;  %vm525_vm13 = vcmp.eq.f32.partialorder %v1140_v0, %v1191_v36 }
  0x72   : > { %s1050_s30 = smov 16   ;;  %v536_v41 = vsel %vm530_vm10, %v1179_v31, 20  ;;  %v532_v54 = vsel %vm526_vm11, %v1173_v21, 20  ;;  %vm528_vm14 = vcmp.eq.f32.partialorder %v1153_v5, %v1193_v37  ;;  %v535_v3 = vsel %vm529_vm12, %v1179_v31, 20  ;;  %s793_s22 = sshll.u32 %s1382_s12, 1 }
  0x73   : > { %816 = dma.vmem_to_hbm [thread:$0]  (%p1118_p4), %s605_s24, 768, %s607_s6, %s582_s7, %s1048_s26, %s1049_s29, %s1050_s30   ;;  %v551_v10 = vsel %vm292_vm0, %v536_v41, 2147483647  ;;  %v531_v1 = vsel %vm525_vm13, %v1173_v21, 20  ;;  %v534_v42 = vsel %vm528_vm14, %v1176_v30, 20  ;;  %vm527_vm2 = vcmp.eq.f32.partialorder %v1151_v4, %v1191_v36 }
  0x74   : > { %vm552_vm15 = vcmp.lt.s32.totalorder %v532_v54, %v551_v10  ;;  %v537_v2 = vsel %vm292_vm0, %v535_v3, 2147483647  ;;  %v533_v0 = vsel %vm527_vm2, %v1176_v30, 20  ;;  %s806_s24 = sshll.u32 %s1036_s18, 1  ;;  %s1427_s8 = sand.u32 1, %s788_s21   ;;  %vm569_vm11 = vcmp.lt.s32.totalorder %v385_v13, 256 }
  0x75   : > { %v553_v9 = vsel %vm552_vm15, %v532_v54, %v551_v10  ;;  %vm538_vm3 = vcmp.lt.s32.totalorder %v531_v1, %v537_v2  ;;  %s620_s7 = scalar_lea.hbm %s1489_s3, %s806_s24  ;;  %s254_s9 = scalar_lea.vmem [#allocation4], %s793_s22 }
  0x76   : > { %vm554_vm4 = vcmp.lt.s32.totalorder %v553_v9, %v534_v42  ;;  %v539_v5 = vsel %vm538_vm3, %v531_v1, %v537_v2  ;;  %s622_s10 = sshll.u32 %s254_s9, 4  ;;  %s624_s11 = sshll.u32 %s620_s7, 4  ;;  %s623_s10 = int_to_ptr.vmem [resolvable:$true] %s622_s10  ;;  %s625_s11 = int_to_ptr.hbm [resolvable:$true] %s624_s11 }
  0x77   : > { %v555_v37 = vsel %vm554_vm4, %v553_v9, %v534_v42  ;;  %vm540_vm5 = vcmp.lt.s32.totalorder %v539_v5, %v533_v0  ;;  %s587_s21 = scalar_lea.sflag [#allocation5], %s1427_s8  ;;  %s948_s13 = sshra.s32 %s625_s11, 4  ;;  %s949_s13 = int_to_ptr.hbm [resolvable:$true] %s948_s13 }
  0x78   : > { %v556_v31 = vrot.slane %v555_v37, 4  ;;  %v541_v12 = vsel %vm540_vm5, %v539_v5, %v533_v0  ;;  %s950_s14 = scalar_lea.hbm %s949_s13, 2  ;;  %s954_s30 = scalar_lea.hbm %s1489_s3, 4 }
  0x79   : > { %v542_v21 = vrot.slane %v541_v12, 4  ;;  %p951_p6 = scmp.ne.s32.totalorder %s949_s13, %s950_s14  ;;  %p955_p10 = scmp.lt.s32.totalorder %s949_s13, %s1489_s3 }
  0x7a   : > { %vm557_vm6 = vcmp.lt.s32.totalorder %v555_v37, %v556_v31  ;;  %p956_p11 = scmp.lt.s32.totalorder %s954_s30, %s950_s14 }
  0x7b   : > { %v558_v20 = vsel %vm557_vm6, %v555_v37, %v556_v31  ;;  %vm543_vm0 = vcmp.lt.s32.totalorder %v541_v12, %v542_v21  ;;  %p952_p7 = pnand %p951_p6, %p1118_p4 }
  0x7c   : > { %v559_v44 = vrot.slane %v558_v20, 2  ;;  %v544_v46 = vsel %vm543_vm0, %v541_v12, %v542_v21  ;;  %p957_p12 = por %p956_p11, %p955_p10 }
  0x7d   : > { %v545_v52 = vrot.slane %v544_v46, 2  ;;  %p953_p9 = pneg %p952_p7 }
  0x7e   : > { %vm560_vm7 = vcmp.lt.s32.totalorder %v558_v20, %v559_v44 }
  0x7f   : > { %v561_v4 = vsel %vm560_vm7, %v558_v20, %v559_v44  ;;  %vm546_vm8 = vcmp.lt.s32.totalorder %v544_v46, %v545_v52  ;;  %p958_p13 = pnand %p957_p12, %p953_p9 }
  0x80   : > { %v562_v30 = vrot.slane %v561_v4, 1  ;;  %v547_v36 = vsel %vm546_vm8, %v544_v46, %v545_v52 }
  0x81   : > { %v548_v63 = vrot.slane %v547_v36, 1 }
  0x82   : > { %vm563_vm9 = vcmp.lt.s32.totalorder %v561_v4, %v562_v30 }
  0x83   : > { %v564_v45 = vsel %vm563_vm9, %v561_v4, %v562_v30  ;;  %vm549_vm10 = vcmp.lt.s32.totalorder %v547_v36, %v548_v63 }
  0x84   : > { %v565_v28 = vrot.slane %v564_v45, 7  ;;  %v550_v47 = vsel %vm549_vm10, %v547_v36, %v548_v63 }
  0x86   : > { %v566_v48 = vsel %vm446_vm1, %v550_v47, %v565_v28 }
  0x87   : > { %571 = vst.msk [vmem:[%s254_s9] sm:$0x3] %vm569_vm11, %v566_v48 }
  0xd3   : > { %v451_v25 = vpop.xlane.xlu0 %450 }
  0xd4   : > { %v452_v26 = vrot.slane %v451_v25, 4 }
  0xd6   : > { %v453_v32 = vadd.f32 %v452_v26, %v451_v25 }
  0xd8   : > { %v454_v34 = vrot.slane %v453_v32, 2 }
  0xda   : > { %v455_v35 = vadd.f32 %v454_v34, %v453_v32 }
  0xdb   : > { %v463_v39 = vpop.xlane.xlu0 %462 }
  0xdc   : > { %v464_v23 = vrot.slane %v463_v39, 4  ;;  %v456_v43 = vrot.slane %v455_v35, 1 }
  0xde   : > { %v465_v29 = vadd.f32 %v464_v23, %v463_v39  ;;  %v457_v14 = vadd.f32 %v456_v43, %v455_v35 }
  0xe0   : > { %v466_v50 = vrot.slane %v465_v29, 2  ;;  %812 = vpush %v457_v14 }
  0xe2   : > { %v467_v33 = vadd.f32 %v466_v50, %v465_v29 }
  0xe4   : > { %v468_v58 = vrot.slane %v467_v33, 1 }
  0xe6   : > { %v469_v40 = vadd.f32 %v468_v58, %v467_v33 }
  0xe8   : > { %814 = vpush %v469_v40 }
  0xe9   : > { %961 = shalt.err (!%p958_p13)
}
  0xea   : > { %817 = dma.vmem_to_hbm [thread:$0]  (%p1118_p4), %s623_s10, 32, %s625_s11, %s587_s21   ;;  %v573_v49 = vand.u32 127, %v385_v13 }
  0xeb   : > { %s634_s7 = scalar_lea.hbm %s1490_s4, %s1036_s18  ;;  %s260_s9 = scalar_lea.vmem [#allocation6], %s1382_s12 }
  0xec   : > { %s636_s26 = sshll.u32 %s260_s9, 4  ;;  %vm575_vm1 = vcmp.eq.s32.totalorder %v573_v49, 1  ;;  %s638_s14 = sshll.u32 %s634_s7, 4  ;;  %vm574_vm12 = vcmp.eq.s32.totalorder %v573_v49, 0  ;;  %s637_s26 = int_to_ptr.vmem [resolvable:$true] %s636_s26  ;;  %s639_s14 = int_to_ptr.hbm [resolvable:$true] %s638_s14 }
  0xed   : > { %s976_s10 = sshra.s32 %s639_s14, 4  ;;  %s982_s30 = scalar_lea.hbm %s1490_s4, 2  ;;  %s977_s10 = int_to_ptr.hbm [resolvable:$true] %s976_s10 }
  0xee   : > { %s978_s11 = scalar_lea.hbm %s977_s10, 1  ;;  %p983_p3 = scmp.lt.s32.totalorder %s977_s10, %s1490_s4 }
  0xef   : > { %p979_p0 = scmp.ne.s32.totalorder %s977_s10, %s978_s11  ;;  %p984_p5 = scmp.lt.s32.totalorder %s982_s30, %s978_s11 }
  0xf1   : > { %p980_p1 = pnand %p979_p0, %p1118_p4  ;;  %p985_p6 = por %p984_p5, %p983_p3 }
  0xf3   : > { %p981_p2 = pneg %p980_p1 }
  0xf5   : > { %p986_p7 = pnand %p985_p6, %p981_p2 }
 0x111   : > { %s813_s13 = spop %812 }
 0x112   : > { %v578_v53 = vstv %s813_s13 }
 0x119   : > { %s815_s29 = spop %814 }
 0x11a   : > { %v576_v51 = vstv %s815_s29 }
 0x11b   : > { %v577_v55 = vsel %vm575_vm1, %v576_v51, 0.0 }
 0x11c   : > { %v579_v6 = vsel %vm574_vm12, %v578_v53, %v577_v55 }
 0x11d   : > { %580 = vst [vmem:[%s260_s9] sm:$0x1] %v579_v6 }
 0x11e   : > { %989 = shalt.err (!%p986_p7)
}
 0x11f   : > { %818 = dma.vmem_to_hbm [thread:$0]  (%p1118_p4), %s637_s26, 16, %s639_s14, %s587_s21  }
 0x120 PF: > { %p832_p9 = scmp.ge.s32.totalorder %s1044_s20, 2  ;;  %s650_s5 = sand.u32 1, %s1024_s15  }
 0x121   : > { %s651_s6 = scalar_lea.sflag [#allocation3], %s650_s5 }
 0x122   : > { %p823_p10 = pnand %p832_p9, %p1127_p8 }
 0x124   : > { %p824_p11 = pneg %p823_p10 }
 0x126   : > { %1015 = dma.done.wait (%p824_p11), %s651_s6, 768  }
 0x127   : > { %1017 = vsyncadd (%p824_p11), %s651_s6, 4294966528  ;;  %s1514_s7 = sadd.s32 4294967294, %s1044_s20  }
 0x128   : > { %s660_s9 = sand.u32 1, %s1514_s7  }
 0x129   : > { %s661_s13 = scalar_lea.sflag [#allocation5], %s660_s9 }
 0x12a   : > { %1019 = dma.done.wait (%p824_p11), %s661_s13, 48  }
 0x12b   : > { %1021 = vsyncadd (%p824_p11), %s661_s13, 4294967248  ;;  %s21_s20 = sadd.s32 1, %s1044_s20   ;;  %s1515_s15 = smov %s1028_s16 }
 0x12c   : > { %p18_p4 = scmp.ge.s32.totalorder %s21_s20, 4   ;;  %s1516_s16 = smov %s1032_s17 }
 0x12d   : > { %s1517_s17 = smov %s1133_s28  ;;  %s1518_s18 = smov %s1040_s19 }
 0x12e   : > { %s1519_s19 = smov %s1521_s23  ;;  %20 = sbr.rel (!%p18_p4) target bundleno = 6 (0x6), region = 98 }
 0x133   :  { %676 = vsyncpa [#allocation3], 1 }
 0x134   :  { %678 = vsyncpa [#allocation3 + $0x1], 1 }
 0x135   :  { %679 = vsyncpa [#allocation5], 1 }
 0x136   :  { %681 = vsyncpa [#allocation5 + $0x1], 1 }

</bundles_post_ra>
